<compile_context>
chip_gen: v7x
topology: tpu7x:2x2x1
jax: 0.10.0
libtpu: 0.0.40
codegen_flags: <defaults>
</compile_context>

<pallas_src>
import functools

import jax
import jax.numpy as jnp
from jax import lax
from jax.experimental import pallas as pl
from jax.experimental.pallas import tpu as pltpu


def _round_up(x, m):
    return ((x + m - 1) // m) * m


def _pick_tiles(N, M, D):
    """Tile sizes: (8,128)-aligned output tiles, D tiled only when large."""
    TN = 256 if N >= 256 else _round_up(max(N, 1), 8)
    TM = 512 if M >= 512 else _round_up(max(M, 1), 128)
    if D <= 2048:
        TD = D          # single reduction step; block == full feature dim
    else:
        TD = 512        # tile the contraction; D is padded to a multiple of 512
    return TN, TM, TD


_COMPILER_PARAMS = pltpu.CompilerParams(
    dimension_semantics=("parallel", "parallel", "arbitrary"),
    vmem_limit_bytes=32 * 1024 * 1024,
)


def _dnorm2_kernel(x_ref, xx_ref, y_ref, yy_ref, d_ref, acc_ref):
    """d = -2 * (x @ y^T) + |x|^2[:,None] + |y|^2[None,:], accumulated over D-tiles."""
    k = pl.program_id(2)

    @pl.when(k == 0)
    def _():
        acc_ref[...] = jnp.zeros_like(acc_ref)

    acc_ref[...] += lax.dot_general(
        x_ref[...], y_ref[...],
        dimension_numbers=(((1,), (1,)), ((), ())),   # contract on D, no transpose
        preferred_element_type=jnp.float32,
    )

    @pl.when(k == pl.num_programs(2) - 1)
    def _():
        d_ref[...] = -2.0 * acc_ref[...] + xx_ref[...] + yy_ref[...]


def _rbf_fused_kernel(gamma_ref, x_ref, xx_ref, y_ref, yy_ref, k_ref, acc_ref):
    """K = exp(-gamma * dnorm2), dnorm2 recomputed in VMEM (no HBM round trip)."""
    k = pl.program_id(2)

    @pl.when(k == 0)
    def _():
        acc_ref[...] = jnp.zeros_like(acc_ref)

    acc_ref[...] += lax.dot_general(
        x_ref[...], y_ref[...],
        dimension_numbers=(((1,), (1,)), ((), ())),
        preferred_element_type=jnp.float32,
    )

    @pl.when(k == pl.num_programs(2) - 1)
    def _():
        gamma = gamma_ref[0]
        d = -2.0 * acc_ref[...] + xx_ref[...] + yy_ref[...]
        k_ref[...] = jnp.exp(-gamma * d)


def _grid_and_specs(Np, Mp, Dp, TN, TM, TD):
    grid = (Np // TN, Mp // TM, Dp // TD)
    in_specs = [
        pl.BlockSpec((TN, TD), lambda i, j, k: (i, k)),    # X tile
        pl.BlockSpec((TN, 1), lambda i, j, k: (i, 0)),     # |x|^2 column
        pl.BlockSpec((TM, TD), lambda i, j, k: (j, k)),    # Y tile
        pl.BlockSpec((1, TM), lambda i, j, k: (0, j)),     # |y|^2 row (lane-major)
    ]
    out_spec = pl.BlockSpec((TN, TM), lambda i, j, k: (i, j))   # resident across k
    scratch = [pltpu.VMEM((TN, TM), jnp.float32)]
    return grid, in_specs, out_spec, scratch


def _pairwise_dnorm2(Xp, xx, Yp, yy, TN, TM, TD):
    Np, Dp = Xp.shape
    Mp, _ = Yp.shape
    grid, in_specs, out_spec, scratch = _grid_and_specs(Np, Mp, Dp, TN, TM, TD)
    return pl.pallas_call(
        _dnorm2_kernel,
        out_shape=jax.ShapeDtypeStruct((Np, Mp), jnp.float32),
        grid=grid,
        in_specs=in_specs,
        out_specs=out_spec,
        scratch_shapes=scratch,
        compiler_params=_COMPILER_PARAMS,
    )(Xp, xx, Yp, yy)


def _rbf_fused(gamma, Xp, xx, Yp, yy, TN, TM, TD):
    Np, Dp = Xp.shape
    Mp, _ = Yp.shape
    grid, in_specs, out_spec, scratch = _grid_and_specs(Np, Mp, Dp, TN, TM, TD)
    gamma_arr = jnp.asarray(gamma, jnp.float32).reshape(1)
    return pl.pallas_call(
        _rbf_fused_kernel,
        out_shape=jax.ShapeDtypeStruct((Np, Mp), jnp.float32),
        grid=grid,
        in_specs=[pl.BlockSpec(memory_space=pltpu.MemorySpace.SMEM)] + in_specs,
        out_specs=out_spec,
        scratch_shapes=scratch,
        compiler_params=_COMPILER_PARAMS,
    )(gamma_arr, Xp, xx, Yp, yy)


@functools.partial(jax.jit, static_argnames=("sigma",))
def rbf_forward(X, Y, sigma=None):
    """Pallas implementation of RBF.forward(X, Y)."""
    X = X.astype(jnp.float32)
    Y = Y.astype(jnp.float32)
    N, D = X.shape
    M, _ = Y.shape

    TN, TM, TD = _pick_tiles(N, M, D)
    Np = _round_up(N, TN)
    Mp = _round_up(M, TM)
    Dp = D if TD == D else _round_up(D, TD)

    # Pad rows so output tiles are lane/sublane-dense and (optionally) pad D to
    # the reduction tile.  Zero-padding leaves dot products and norms unchanged;
    # padded output rows/cols are sliced off below.
    Xp = jnp.pad(X, ((0, Np - N), (0, Dp - D)))
    Yp = jnp.pad(Y, ((0, Mp - M), (0, Dp - D)))

    # Hoisted row-norms (diag(X X^T), diag(Y Y^T)) computed once, fed to the
    # kernels in lane-friendly layouts — no per-tile XLU reduce/relayout.
    xx = jnp.sum(Xp * Xp, axis=-1, keepdims=True)        # (Np, 1)
    yy = jnp.sum(Yp * Yp, axis=-1).reshape(1, Mp)        # (1, Mp)

    if sigma is None:
        dnorm2 = _pairwise_dnorm2(Xp, xx, Yp, yy, TN, TM, TD)[:N, :M]
        # torch.median over an even-count tensor returns the LOWER middle value.
        # TODO(synk): replace the full sort with a selection algorithm for very
        # large N*M; the sort dominates the sigma=None path at scale.
        med = jnp.sort(dnorm2.reshape(-1))[(N * M - 1) // 2]
        h = med / (2.0 * jnp.log(jnp.float32(N) + 1.0))
        sigma_val = jnp.sqrt(h) * 0.001
    else:
        sigma_val = jnp.float32(sigma)

    gamma = 1.0 / (1e-8 + 2.0 * sigma_val ** 2)
    K = _rbf_fused(gamma, Xp, xx, Yp, yy, TN, TM, TD)
    return K[:N, :M]


def _reference(X, Y, sigma=None):
    """Pure-JAX reference mirroring the PyTorch forward (sanity check)."""
    XX = X @ X.T
    XY = X @ Y.T
    YY = Y @ Y.T
    dnorm2 = -2.0 * XY + jnp.diag(XX)[:, None] + jnp.diag(YY)[None, :]
    if sigma is None:
        N, M = dnorm2.shape
        med = jnp.sort(dnorm2.reshape(-1))[(N * M - 1) // 2]
        h = med / (2.0 * jnp.log(jnp.float32(X.shape[0]) + 1.0))
        sigma = jnp.sqrt(h) * 0.001
    gamma = 1.0 / (1e-8 + 2.0 * sigma ** 2)
    return jnp.exp(-gamma * dnorm2)


if __name__ == "__main__":
    # Small shapes consistent with the forward: X, Y are (particles, features).
    N, M, D = 8, 8, 32
    key = jax.random.PRNGKey(0)
    kx, ky = jax.random.split(key)
    X = jax.random.normal(kx, (N, D), dtype=jnp.float32)
    Y = jax.random.normal(ky, (M, D), dtype=jnp.float32)

    # sigma=None path (median-based bandwidth), as in the module default.
    K = rbf_forward(X, Y, sigma=None)
    jax.block_until_ready(K)
    K_ref = _reference(X, Y, sigma=None)
    assert K.shape == (N, M)
    assert jnp.allclose(K, K_ref, rtol=1e-4, atol=1e-5), "mismatch vs reference"

    # Fixed-sigma path.
    K2 = rbf_forward(X, Y, sigma=1.5)
    jax.block_until_ready(K2)
    K2_ref = _reference(X, Y, sigma=1.5)
    assert jnp.allclose(K2, K2_ref, rtol=1e-4, atol=1e-5), "mismatch vs reference (fixed sigma)"

    print("KERNEL_OK")
</pallas_src>

<mosaic_0001>
module attributes {stable_mosaic.version = 11 : i64} {
  func.func @_dnorm2_kernel(%arg0: i32, %arg1: i32, %arg2: i32, %arg3: memref<8x32xf32, #tpu.memory_space<vmem>>, %arg4: memref<8x1xf32, #tpu.memory_space<vmem>>, %arg5: memref<128x32xf32, #tpu.memory_space<vmem>>, %arg6: memref<1x128xf32, #tpu.memory_space<vmem>>, %arg7: memref<8x128xf32, #tpu.memory_space<vmem>>, %arg8: memref<8x128xf32, #tpu.memory_space<vmem>>) attributes {dimension_semantics = [#tpu.dimension_semantics<parallel>, #tpu.dimension_semantics<parallel>, #tpu.dimension_semantics<arbitrary>], iteration_bounds = array<i64: 1, 1, 1>, scalar_prefetch = 0 : i64, scratch_operands = 1 : i64, tpu.core_type = #tpu.core_type<tc>, window_params = [{transform_indices = @transform_0, window_bounds = array<i64: 8, 32>}, {transform_indices = @transform_1, window_bounds = array<i64: 8, 1>}, {transform_indices = @transform_2, window_bounds = array<i64: 128, 32>}, {transform_indices = @transform_3, window_bounds = array<i64: 1, 128>}, {transform_indices = @transform_4, window_bounds = array<i64: 8, 128>}]} {
    %c0_i32 = arith.constant 0 : i32
    %0 = arith.cmpi eq, %arg2, %c0_i32 : i32
    %1 = arith.extui %0 : i1 to i32
    %c0_i32_0 = arith.constant 0 : i32
    %2 = arith.cmpi ne, %1, %c0_i32_0 : i32
    scf.if %2 {
      %cst_10 = arith.constant 0.000000e+00 : f32
      %12 = vector.broadcast %cst_10 : f32 to vector<8x128xf32>
      %c0_11 = arith.constant 0 : index
      %c0_12 = arith.constant 0 : index
      %13 = vector.load %arg8[%c0_11, %c0_12] : memref<8x128xf32, #tpu.memory_space<vmem>>, vector<8x128xf32>
      tpu.vector_store %arg8[%c0_11, %c0_12], %12 {strides = array<i32>} : memref<8x128xf32, #tpu.memory_space<vmem>>, vector<8x128xf32>,
    } else {
    }
    %c0 = arith.constant 0 : index
    %c0_1 = arith.constant 0 : index
    %3 = vector.load %arg8[%c0, %c0_1] : memref<8x128xf32, #tpu.memory_space<vmem>>, vector<8x128xf32>
    %c0_2 = arith.constant 0 : index
    %c0_3 = arith.constant 0 : index
    %4 = vector.load %arg3[%c0_2, %c0_3] : memref<8x32xf32, #tpu.memory_space<vmem>>, vector<8x32xf32>
    %c0_4 = arith.constant 0 : index
    %c0_5 = arith.constant 0 : index
    %5 = vector.load %arg5[%c0_4, %c0_5] : memref<128x32xf32, #tpu.memory_space<vmem>>, vector<128x32xf32>
    %cst = arith.constant dense<0.000000e+00> : vector<8x128xf32>
    %6 = tpu.matmul %4, %5, %cst {dimension_numbers = #tpu.dot_dimension_numbers<[1], [1], [0], [0], [0, 0, 1, 0], [], []>} : vector<8x32xf32>, vector<128x32xf32>, vector<8x128xf32> -> vector<8x128xf32>
    %7 = arith.addf %3, %6 : vector<8x128xf32>
    %c0_6 = arith.constant 0 : index
    %c0_7 = arith.constant 0 : index
    %8 = vector.load %arg8[%c0_6, %c0_7] : memref<8x128xf32, #tpu.memory_space<vmem>>, vector<8x128xf32>
    tpu.vector_store %arg8[%c0_6, %c0_7], %7 {strides = array<i32>} : memref<8x128xf32, #tpu.memory_space<vmem>>, vector<8x128xf32>,
    %c0_i32_8 = arith.constant 0 : i32
    %9 = arith.cmpi eq, %arg2, %c0_i32_8 : i32
    %10 = arith.extui %9 : i1 to i32
    %c0_i32_9 = arith.constant 0 : i32
    %11 = arith.cmpi ne, %10, %c0_i32_9 : i32
    scf.if %11 {
      %c0_10 = arith.constant 0 : index
      %c0_11 = arith.constant 0 : index
      %12 = vector.load %arg8[%c0_10, %c0_11] : memref<8x128xf32, #tpu.memory_space<vmem>>, vector<8x128xf32>
      %cst_12 = arith.constant -2.000000e+00 : f32
      %13 = vector.broadcast %cst_12 : f32 to vector<8x128xf32>
      %14 = arith.mulf %13, %12 : vector<8x128xf32>
      %c0_13 = arith.constant 0 : index
      %c0_14 = arith.constant 0 : index
      %15 = vector.load %arg4[%c0_13, %c0_14] : memref<8x1xf32, #tpu.memory_space<vmem>>, vector<8x1xf32>
      %16 = vector.broadcast %15 : vector<8x1xf32> to vector<8x128xf32>
      %17 = arith.addf %14, %16 : vector<8x128xf32>
      %c0_15 = arith.constant 0 : index
      %c0_16 = arith.constant 0 : index
      %18 = vector.load %arg6[%c0_15, %c0_16] : memref<1x128xf32, #tpu.memory_space<vmem>>, vector<1x128xf32>
      %19 = vector.broadcast %18 : vector<1x128xf32> to vector<8x128xf32>
      %20 = arith.addf %17, %19 : vector<8x128xf32>
      %c0_17 = arith.constant 0 : index
      %c0_18 = arith.constant 0 : index
      %21 = vector.load %arg7[%c0_17, %c0_18] : memref<8x128xf32, #tpu.memory_space<vmem>>, vector<8x128xf32>
      tpu.vector_store %arg7[%c0_17, %c0_18], %20 {strides = array<i32>} : memref<8x128xf32, #tpu.memory_space<vmem>>, vector<8x128xf32>,
    } else {
    }
    return
  }
  func.func @transform_0(%arg0: i32, %arg1: i32, %arg2: i32) -> (i32, i32) {
    %c0_i32 = arith.constant 0 : i32
    return %arg0, %arg2 : i32, i32
  }
  func.func @transform_1(%arg0: i32, %arg1: i32, %arg2: i32) -> (i32, i32) {
    %c0_i32 = arith.constant 0 : i32
    %c0_i32_0 = arith.constant 0 : i32
    return %arg0, %c0_i32 : i32, i32
  }
  func.func @transform_2(%arg0: i32, %arg1: i32, %arg2: i32) -> (i32, i32) {
    %c0_i32 = arith.constant 0 : i32
    return %arg1, %arg2 : i32, i32
  }
  func.func @transform_3(%arg0: i32, %arg1: i32, %arg2: i32) -> (i32, i32) {
    %c0_i32 = arith.constant 0 : i32
    %c0_i32_0 = arith.constant 0 : i32
    return %c0_i32, %arg1 : i32, i32
  }
  func.func @transform_4(%arg0: i32, %arg1: i32, %arg2: i32) -> (i32, i32) {
    %c0_i32 = arith.constant 0 : i32
    return %arg0, %arg1 : i32, i32
  }
}

module attributes {stable_mosaic.version = 11 : i64} {
  func.func @_rbf_fused_kernel(%arg0: i32, %arg1: i32, %arg2: i32, %arg3: memref<1xf32, #tpu.memory_space<smem>>, %arg4: memref<8x32xf32, #tpu.memory_space<vmem>>, %arg5: memref<8x1xf32, #tpu.memory_space<vmem>>, %arg6: memref<128x32xf32, #tpu.memory_space<vmem>>, %arg7: memref<1x128xf32, #tpu.memory_space<vmem>>, %arg8: memref<8x128xf32, #tpu.memory_space<vmem>>, %arg9: memref<8x128xf32, #tpu.memory_space<vmem>>) attributes {dimension_semantics = [#tpu.dimension_semantics<parallel>, #tpu.dimension_semantics<parallel>, #tpu.dimension_semantics<arbitrary>], iteration_bounds = array<i64: 1, 1, 1>, scalar_prefetch = 0 : i64, scratch_operands = 1 : i64, tpu.core_type = #tpu.core_type<tc>, window_params = [{transform_indices = @transform_0, window_bounds = array<i64: 1>}, {transform_indices = @transform_1, window_bounds = array<i64: 8, 32>}, {transform_indices = @transform_2, window_bounds = array<i64: 8, 1>}, {transform_indices = @transform_3, window_bounds = array<i64: 128, 32>}, {transform_indices = @transform_4, window_bounds = array<i64: 1, 128>}, {transform_indices = @transform_5, window_bounds = array<i64: 8, 128>}]} {
    %c0_i32 = arith.constant 0 : i32
    %0 = arith.cmpi eq, %arg2, %c0_i32 : i32
    %1 = arith.extui %0 : i1 to i32
    %c0_i32_0 = arith.constant 0 : i32
    %2 = arith.cmpi ne, %1, %c0_i32_0 : i32
    scf.if %2 {
      %cst_10 = arith.constant 0.000000e+00 : f32
      %12 = vector.broadcast %cst_10 : f32 to vector<8x128xf32>
      %c0_11 = arith.constant 0 : index
      %c0_12 = arith.constant 0 : index
      %13 = vector.load %arg9[%c0_11, %c0_12] : memref<8x128xf32, #tpu.memory_space<vmem>>, vector<8x128xf32>
      tpu.vector_store %arg9[%c0_11, %c0_12], %12 {strides = array<i32>} : memref<8x128xf32, #tpu.memory_space<vmem>>, vector<8x128xf32>,
    } else {
    }
    %c0 = arith.constant 0 : index
    %c0_1 = arith.constant 0 : index
    %3 = vector.load %arg9[%c0, %c0_1] : memref<8x128xf32, #tpu.memory_space<vmem>>, vector<8x128xf32>
    %c0_2 = arith.constant 0 : index
    %c0_3 = arith.constant 0 : index
    %4 = vector.load %arg4[%c0_2, %c0_3] : memref<8x32xf32, #tpu.memory_space<vmem>>, vector<8x32xf32>
    %c0_4 = arith.constant 0 : index
    %c0_5 = arith.constant 0 : index
    %5 = vector.load %arg6[%c0_4, %c0_5] : memref<128x32xf32, #tpu.memory_space<vmem>>, vector<128x32xf32>
    %cst = arith.constant dense<0.000000e+00> : vector<8x128xf32>
    %6 = tpu.matmul %4, %5, %cst {dimension_numbers = #tpu.dot_dimension_numbers<[1], [1], [0], [0], [0, 0, 1, 0], [], []>} : vector<8x32xf32>, vector<128x32xf32>, vector<8x128xf32> -> vector<8x128xf32>
    %7 = arith.addf %3, %6 : vector<8x128xf32>
    %c0_6 = arith.constant 0 : index
    %c0_7 = arith.constant 0 : index
    %8 = vector.load %arg9[%c0_6, %c0_7] : memref<8x128xf32, #tpu.memory_space<vmem>>, vector<8x128xf32>
    tpu.vector_store %arg9[%c0_6, %c0_7], %7 {strides = array<i32>} : memref<8x128xf32, #tpu.memory_space<vmem>>, vector<8x128xf32>,
    %c0_i32_8 = arith.constant 0 : i32
    %9 = arith.cmpi eq, %arg2, %c0_i32_8 : i32
    %10 = arith.extui %9 : i1 to i32
    %c0_i32_9 = arith.constant 0 : i32
    %11 = arith.cmpi ne, %10, %c0_i32_9 : i32
    scf.if %11 {
      %c0_10 = arith.constant 0 : index
      %12 = memref.load %arg3[%c0_10] : memref<1xf32, #tpu.memory_space<smem>>
      %c0_11 = arith.constant 0 : index
      %c0_12 = arith.constant 0 : index
      %13 = vector.load %arg9[%c0_11, %c0_12] : memref<8x128xf32, #tpu.memory_space<vmem>>, vector<8x128xf32>
      %cst_13 = arith.constant -2.000000e+00 : f32
      %14 = vector.broadcast %cst_13 : f32 to vector<8x128xf32>
      %15 = arith.mulf %14, %13 : vector<8x128xf32>
      %c0_14 = arith.constant 0 : index
      %c0_15 = arith.constant 0 : index
      %16 = vector.load %arg5[%c0_14, %c0_15] : memref<8x1xf32, #tpu.memory_space<vmem>>, vector<8x1xf32>
      %17 = vector.broadcast %16 : vector<8x1xf32> to vector<8x128xf32>
      %18 = arith.addf %15, %17 : vector<8x128xf32>
      %c0_16 = arith.constant 0 : index
      %c0_17 = arith.constant 0 : index
      %19 = vector.load %arg7[%c0_16, %c0_17] : memref<1x128xf32, #tpu.memory_space<vmem>>, vector<1x128xf32>
      %20 = vector.broadcast %19 : vector<1x128xf32> to vector<8x128xf32>
      %21 = arith.addf %18, %20 : vector<8x128xf32>
      %cst_18 = arith.constant 0.000000e+00 : f32
      %22 = arith.subf %cst_18, %12 : f32
      %23 = vector.broadcast %22 : f32 to vector<8x128xf32>
      %24 = arith.mulf %23, %21 : vector<8x128xf32>
      %25 = math.exp %24 : vector<8x128xf32>
      %c0_19 = arith.constant 0 : index
      %c0_20 = arith.constant 0 : index
      %26 = vector.load %arg8[%c0_19, %c0_20] : memref<8x128xf32, #tpu.memory_space<vmem>>, vector<8x128xf32>
      tpu.vector_store %arg8[%c0_19, %c0_20], %25 {strides = array<i32>} : memref<8x128xf32, #tpu.memory_space<vmem>>, vector<8x128xf32>,
    } else {
    }
    return
  }
  func.func @transform_0(%arg0: i32, %arg1: i32, %arg2: i32) -> i32 {
    %c0_i32 = arith.constant 0 : i32
    %c0_i32_0 = arith.constant 0 : i32
    return %c0_i32 : i32
  }
  func.func @transform_1(%arg0: i32, %arg1: i32, %arg2: i32) -> (i32, i32) {
    %c0_i32 = arith.constant 0 : i32
    return %arg0, %arg2 : i32, i32
  }
  func.func @transform_2(%arg0: i32, %arg1: i32, %arg2: i32) -> (i32, i32) {
    %c0_i32 = arith.constant 0 : i32
    %c0_i32_0 = arith.constant 0 : i32
    return %arg0, %c0_i32 : i32, i32
  }
  func.func @transform_3(%arg0: i32, %arg1: i32, %arg2: i32) -> (i32, i32) {
    %c0_i32 = arith.constant 0 : i32
    return %arg1, %arg2 : i32, i32
  }
  func.func @transform_4(%arg0: i32, %arg1: i32, %arg2: i32) -> (i32, i32) {
    %c0_i32 = arith.constant 0 : i32
    %c0_i32_0 = arith.constant 0 : i32
    return %c0_i32, %arg1 : i32, i32
  }
  func.func @transform_5(%arg0: i32, %arg1: i32, %arg2: i32) -> (i32, i32) {
    %c0_i32 = arith.constant 0 : i32
    return %arg0, %arg1 : i32, i32
  }
}

</mosaic_0001>

<bundles_post_ra>
// kernel: rbf_forward.2
= control target key start
LH: loop header
LB: loop body
LE: loop exit
PB: predicated region body
PF: predicated region fallthrough
CT: control target
= control target key end

     0   :  { %vm40_vm0 = vcmask 261120   ;;  %v296_v0 = vmov 0.0|0.0   ;;  %vm297_vm2 = vmmov 0   ;;  %v298_v4 = vmov 0.0   ;;  %s408_s2 = inlined_call_operand.vmem [shape: f32[128,32], index: 2, kind: input, shape index: {}]   ;;  %s409_s1 = inlined_call_operand.vmem [shape: f32[8,1], index: 1, kind: input, shape index: {}]   ;;  %s410_s0 = inlined_call_operand.vmem [shape: f32[8,32], index: 0, kind: input, shape index: {}]   ;;  %s411_s3 = inlined_call_operand.vmem [shape: f32[1,128], index: 3, kind: input, shape index: {}]   ;;  %s412_s4 = inlined_call_operand.vmem [shape: f32[8,128], index: 4, kind: output, shape index: {}]  }
   0x1   :  { %259 = vmatprep.subr.bf16.mxu0 %v296_v0  ;;  %v24_v1 = vld [vmem:[%s408_s2] sm:$0xff]  ;;  %v25_v2 = vld [vmem:[%s408_s2 + $0x8] sm:$0xff]  ;;  %vm333_vm1 = vmpackc.low %vm40_vm0, %vm40_vm0  ;;  %256 = vmatprep.mubr.msk.f32.mxu0 %vm297_vm2, %v298_v4  ;;  %v299_v6 = vmov 0  }
   0x2   :  { %v260_v5 = vpack.c.bf16 %v25_v2, %v24_v1  ;;  %295 = vset.pattern.permute.xlu0 %v299_v6  ;;  %v26_v7 = vld [vmem:[%s408_s2 + $0x10] sm:$0xff]  ;;  %v27_v8 = vld [vmem:[%s408_s2 + $0x18] sm:$0xff]  ;;  %v169_v9 = vld [vmem:[%s409_s1] sm:$0xff] }
   0x3   :  { %v264_v10 = vpack.c.bf16 %v27_v8, %v26_v7  ;;  %172 = vperm.xlu0 %295, %v169_v9   ;;  %v28_v11 = vld [vmem:[%s408_s2 + $0x20] sm:$0xff]  ;;  %v29_v12 = vld [vmem:[%s408_s2 + $0x28] sm:$0xff]  ;;  %v30_v14 = vld [vmem:[%s408_s2 + $0x30] sm:$0xff] }
   0x4   :  { %262 = vmatpush3.bf16.xpose.msk.msra.mxu0 %vm333_vm1, %v260_v5  ;;  %v268_v13 = vpack.c.bf16 %v29_v12, %v28_v11  ;;  %v31_v15 = vld [vmem:[%s408_s2 + $0x38] sm:$0xff]  ;;  %v32_v17 = vld [vmem:[%s408_s2 + $0x40] sm:$0xff]  ;;  %v33_v18 = vld [vmem:[%s408_s2 + $0x48] sm:$0xff] }
   0x5   :  { %263 = vmatprep.subr.bf16.mxu0 %v296_v0  ;;  %v272_v16 = vpack.c.bf16 %v31_v15, %v30_v14  ;;  %v276_v19 = vpack.c.bf16 %v33_v18, %v32_v17  ;;  %v34_v20 = vld [vmem:[%s408_s2 + $0x50] sm:$0xff]  ;;  %v35_v21 = vld [vmem:[%s408_s2 + $0x58] sm:$0xff]  ;;  %v36_v23 = vld [vmem:[%s408_s2 + $0x60] sm:$0xff] }
   0x6   :  { %v280_v22 = vpack.c.bf16 %v35_v21, %v34_v20  ;;  %v37_v24 = vld [vmem:[%s408_s2 + $0x68] sm:$0xff]  ;;  %v38_v26 = vld [vmem:[%s408_s2 + $0x70] sm:$0xff]  ;;  %v39_v27 = vld [vmem:[%s408_s2 + $0x78] sm:$0xff] }
   0x7   :  { %v284_v25 = vpack.c.bf16 %v37_v24, %v36_v23  ;;  %v288_v28 = vpack.c.bf16 %v39_v27, %v38_v26  ;;  %v23_v29 = vld [vmem:[%s410_s0] sm:$0xff] }
   0x8   :  { %v206_v34 = vld [vmem:[%s411_s3] ss:$0 sm:$0xff] }
   0xc   :  { %266 = vmatpush3.bf16.xpose.msk.msra.mxu0 %vm333_vm1, %v264_v10 }
   0xd   :  { %267 = vmatprep.subr.bf16.mxu0 %v296_v0 }
  0x14   :  { %270 = vmatpush3.bf16.xpose.msk.msra.mxu0 %vm333_vm1, %v268_v13 }
  0x15   :  { %271 = vmatprep.subr.bf16.mxu0 %v296_v0 }
  0x1c   :  { %274 = vmatpush3.bf16.xpose.msk.msra.mxu0 %vm333_vm1, %v272_v16 }
  0x1d   :  { %275 = vmatprep.subr.bf16.mxu0 %v296_v0 }
  0x24   :  { %278 = vmatpush3.bf16.xpose.msk.msra.mxu0 %vm333_vm1, %v276_v19 }
  0x25   :  { %279 = vmatprep.subr.bf16.mxu0 %v296_v0 }
  0x2c   :  { %282 = vmatpush3.bf16.xpose.msk.msra.mxu0 %vm333_vm1, %v280_v22 }
  0x2d   :  { %283 = vmatprep.subr.bf16.mxu0 %v296_v0 }
  0x34   :  { %286 = vmatpush3.bf16.xpose.msk.msra.mxu0 %vm333_vm1, %v284_v25 }
  0x35   :  { %287 = vmatprep.subr.bf16.mxu0 %v296_v0 }
  0x3c   :  { %290 = vmatpush3.bf16.xpose.msk.msra.mxu0 %vm333_vm1, %v288_v28 }
  0x43   :  { %257 = vmatmul.mubr.msk.f32.vlgmr.msra.gmra.mrb[0].mxu0 %vm40_vm0, %v23_v29 }
  0x82   :  { %v173_v31 = vpop.permute.xlu0 %172 }
 0x116   :  { %v158_v30 = vpop.f32.mrb[0].mxu0 }
 0x117   :  { %v168_v32 = vmul.f32 -2.0, %v158_v30  ;;  %v258_v33 = vpop.f32.mrb[1].mxu0 }
 0x119   :  { %v175_v35 = vadd.f32 %v173_v31, %v168_v32 }
 0x11b   :  { %v183_v36 = vadd.f32 %v206_v34, %v175_v35 }
 0x11d   :  { %184 = vst [vmem:[%s412_s4] sm:$0xff] %v183_v36 }

// kernel: rbf_forward.3
= control target key start
LH: loop header
LB: loop body
LE: loop exit
PB: predicated region body
PF: predicated region fallthrough
CT: control target
= control target key end

     0   :  { %vm45_vm0 = vcmask 261120   ;;  %v344_v2 = vmov 0.0|0.0   ;;  %vm345_vm2 = vmmov 0   ;;  %v346_v5 = vmov 0.0   ;;  %s474_s0 = inlined_call_operand.<no memory space> [shape: f32[1], index: 0, kind: input, shape index: {}]   ;;  %s475_s1 = inlined_call_operand.vmem [shape: f32[8,32], index: 1, kind: input, shape index: {}]   ;;  %s476_s2 = inlined_call_operand.vmem [shape: f32[8,1], index: 2, kind: input, shape index: {}]   ;;  %s477_s3 = inlined_call_operand.vmem [shape: f32[128,32], index: 3, kind: input, shape index: {}]   ;;  %s478_s4 = inlined_call_operand.vmem [shape: f32[1,128], index: 4, kind: input, shape index: {}]   ;;  %s479_s5 = inlined_call_operand.hbm [shape: f32[8,128], index: 5, kind: output, shape index: {}]  }
   0x1   :  { %v29_v0 = vld [vmem:[%s477_s3] sm:$0xff]  ;;  %v30_v1 = vld [vmem:[%s477_s3 + $0x8] sm:$0xff]  ;;  %280 = vmatprep.subr.bf16.mxu0 %v344_v2  ;;  %vm387_vm1 = vmpackc.low %vm45_vm0, %vm45_vm0  ;;  %277 = vmatprep.mubr.msk.f32.mxu0 %vm345_vm2, %v346_v5  ;;  %v347_v6 = vmov 0  }
   0x2   :  { %v281_v3 = vpack.c.bf16 %v30_v1, %v29_v0  ;;  %317 = vset.pattern.permute.xlu0 %v347_v6  ;;  %v31_v7 = vld [vmem:[%s477_s3 + $0x10] sm:$0xff]  ;;  %v32_v8 = vld [vmem:[%s477_s3 + $0x18] sm:$0xff]  ;;  %v175_v9 = vld [vmem:[%s476_s2] sm:$0xff] }
   0x4   :  { %283 = vmatpush3.bf16.xpose.msk.msra.mxu0 %vm387_vm1, %v281_v3 }
   0x5   :  { %284 = vmatprep.subr.bf16.mxu0 %v344_v2 }
   0x6   :  { %11 = vsyncpa [#allocation5], 0  ;;  %v285_v10 = vpack.c.bf16 %v32_v8, %v31_v7  ;;  %178 = vperm.xlu0 %317, %v175_v9   ;;  %v33_v11 = vld [vmem:[%s477_s3 + $0x20] sm:$0xff]  ;;  %v34_v12 = vld [vmem:[%s477_s3 + $0x28] sm:$0xff]  ;;  %s190_s30 = ssub.f32 0.0, %s474_s0 }
   0x7   :  { %v289_v13 = vpack.c.bf16 %v34_v12, %v33_v11  ;;  %v35_v14 = vld [vmem:[%s477_s3 + $0x30] sm:$0xff]  ;;  %v36_v15 = vld [vmem:[%s477_s3 + $0x38] sm:$0xff]  ;;  %v37_v17 = vld [vmem:[%s477_s3 + $0x40] sm:$0xff] }
   0x8   :  { %v293_v16 = vpack.c.bf16 %v36_v15, %v35_v14  ;;  %v38_v18 = vld [vmem:[%s477_s3 + $0x48] sm:$0xff]  ;;  %v39_v20 = vld [vmem:[%s477_s3 + $0x50] sm:$0xff]  ;;  %v40_v21 = vld [vmem:[%s477_s3 + $0x58] sm:$0xff]  ;;  %v191_v36 = vstv %s190_s30 }
   0x9   :  { %v297_v19 = vpack.c.bf16 %v38_v18, %v37_v17  ;;  %v301_v22 = vpack.c.bf16 %v40_v21, %v39_v20  ;;  %v41_v23 = vld [vmem:[%s477_s3 + $0x60] sm:$0xff]  ;;  %v42_v24 = vld [vmem:[%s477_s3 + $0x68] sm:$0xff]  ;;  %v43_v26 = vld [vmem:[%s477_s3 + $0x70] sm:$0xff] }
   0xa   :  { %v305_v25 = vpack.c.bf16 %v42_v24, %v41_v23  ;;  %v44_v27 = vld [vmem:[%s477_s3 + $0x78] sm:$0xff]  ;;  %v28_v29 = vld [vmem:[%s475_s1] sm:$0xff]  ;;  %s348_s1 = smov [#allocation4]  }
   0xb   :  { %v309_v28 = vpack.c.bf16 %v44_v27, %v43_v26  ;;  %v227_v34 = vld [vmem:[%s478_s4] ss:$0 sm:$0xff]  ;;  %s202_s2 = sshll.u32 %s348_s1, 4  ;;  %s203_s2 = int_to_ptr.vmem [resolvable:$true] %s202_s2 }
   0xc   :  { %287 = vmatpush3.bf16.xpose.msk.msra.mxu0 %vm387_vm1, %v285_v10  ;;  %s320_s7 = scalar_lea.vmem %s203_s2, 128  ;;  %p325_p1 = scmp.lt.s32.totalorder %s203_s2, %s203_s2 }
   0xd   :  { %288 = vmatprep.subr.bf16.mxu0 %v344_v2  ;;  %p321_p0 = scmp.ne.s32.totalorder %s203_s2, %s320_s7  ;;  %p326_p2 = scmp.lt.s32.totalorder %s320_s7, %s320_s7 }
   0xf   :  { %p327_p3 = por %p326_p2, %p325_p1 }
  0x11   :  { %p328_p4 = pnand %p327_p3, %p321_p0 }
  0x14   :  { %291 = vmatpush3.bf16.xpose.msk.msra.mxu0 %vm387_vm1, %v289_v13 }
  0x15   :  { %292 = vmatprep.subr.bf16.mxu0 %v344_v2 }
  0x1c   :  { %295 = vmatpush3.bf16.xpose.msk.msra.mxu0 %vm387_vm1, %v293_v16 }
  0x1d   :  { %296 = vmatprep.subr.bf16.mxu0 %v344_v2 }
  0x24   :  { %299 = vmatpush3.bf16.xpose.msk.msra.mxu0 %vm387_vm1, %v297_v19 }
  0x25   :  { %300 = vmatprep.subr.bf16.mxu0 %v344_v2 }
  0x2c   :  { %303 = vmatpush3.bf16.xpose.msk.msra.mxu0 %vm387_vm1, %v301_v22 }
  0x2d   :  { %304 = vmatprep.subr.bf16.mxu0 %v344_v2 }
  0x34   :  { %307 = vmatpush3.bf16.xpose.msk.msra.mxu0 %vm387_vm1, %v305_v25 }
  0x35   :  { %308 = vmatprep.subr.bf16.mxu0 %v344_v2 }
  0x3c   :  { %311 = vmatpush3.bf16.xpose.msk.msra.mxu0 %vm387_vm1, %v309_v28 }
  0x43   :  { %278 = vmatmul.mubr.msk.f32.vlgmr.msra.gmra.mrb[0].mxu0 %vm45_vm0, %v28_v29 }
  0x85   :  { %v179_v31 = vpop.permute.xlu0 %178 }
 0x116   :  { %v163_v30 = vpop.f32.mrb[0].mxu0 }
 0x117   :  { %v174_v32 = vmul.f32 -2.0, %v163_v30  ;;  %v279_v33 = vpop.f32.mrb[1].mxu0 }
 0x119   :  { %v181_v35 = vadd.f32 %v179_v31, %v174_v32 }
 0x11b   :  { %v189_v37 = vadd.f32 %v227_v34, %v181_v35 }
 0x11d   :  { %v192_v38 = vmul.f32 %v191_v36, %v189_v37 }
 0x11f   :  { %v193_v39 = vmul.f32 1.442695, %v192_v38 }
 0x121   :  { %318 = vpow2.f32 %v193_v39 }
 0x12b   :  { %v319_v40 = vpop.eup %318 }
 0x12c   :  { %195 = vst [vmem:[#allocation4] sm:$0xff] %v319_v40 }
 0x12d   :  { %331 = shalt.err (!%p328_p4)
}
 0x12e   :  { %s332_s8 = scalar_lea.hbm %s479_s5, 128 }
 0x12f   :  { %p333_p5 = scmp.ne.s32.totalorder %s479_s5, %s332_s8  ;;  %p336_p6 = scmp.lt.u32.totalorder %s332_s8, %s479_s5 }
 0x131   :  { %p338_p7 = pnand %p336_p6, %p333_p5 }
 0x133   :  { %341 = shalt.err (!%p338_p7)
}
 0x134   :  { %205 = dma.vmem_to_hbm [thread:$0]  %s203_s2, 128, %s479_s5, [#allocation5]  }
 0x135   :  { %342 = dma.done.wait [#allocation5], 128  }
 0x136   :  { %343 = vsyncadd [#allocation5], 4294967168 }
 0x137   :  { %209 = vsyncpa [#allocation5], 1 }

</bundles_post_ra>
